<compile_context>
chip_gen: v5e
topology: v5e:2x2
jax: 0.10.0
libtpu: 0.0.40
codegen_flags: <defaults>
</compile_context>

<pallas_src>
import functools

import jax
import jax.numpy as jnp
from jax.experimental import pallas as pl
from jax.experimental.pallas import tpu as pltpu

LANE = 128


def _round_up(x, m):
    return ((x + m - 1) // m) * m


def _sage_fused_kernel(*refs, n_dst_list, num_layers):
    # refs = adj01_0..adj01_{L-1}           bf16 exact 0/1     [n_dst_l, n_src_l]
    #        inv_deg_0..inv_deg_{L-1}       f32  1/deg         [n_dst_l, 1]
    #        feat                           bf16 lane-padded   [n_src_0, F0_pad]
    #        (w_self_l, w_neigh_l, b_l) * L bf16/bf16/f32, lane-padded
    #        out                            f32                [n_dst_{L-1}, F_out_pad]
    adj_refs = refs[:num_layers]
    inv_refs = refs[num_layers:2 * num_layers]
    feat_ref = refs[2 * num_layers]
    wb_refs = refs[2 * num_layers + 1:2 * num_layers + 1 + 3 * num_layers]
    o_ref = refs[-1]

    h = feat_ref[...]                                   # bf16 [N_src, F_pad]
    out = None
    for l in range(num_layers):
        n_dst = n_dst_list[l]
        w_self_ref = wb_refs[3 * l]
        w_neigh_ref = wb_refs[3 * l + 1]
        b_ref = wb_refs[3 * l + 2]

        # Neighbor sum on the MXU with exact 0/1 bf16 A, f32 accumulation,
        # then the 1/deg normalization as a per-row f32 VPU multiply.
        neigh = jnp.dot(adj_refs[l][...], h,
                        preferred_element_type=jnp.float32)     # [n_dst, F_pad]
        neigh = neigh * inv_refs[l][...]                         # f32 row scale

        # dst nodes are the prefix of src nodes (DGL block convention).
        # Two accumulating dots; bf16 prefix of h goes to the MXU directly.
        out = jnp.dot(h[:n_dst, :], w_self_ref[...],
                      preferred_element_type=jnp.float32)
        out = out + jnp.dot(neigh.astype(jnp.bfloat16), w_neigh_ref[...],
                            preferred_element_type=jnp.float32)
        out = out + b_ref[...]

        if l != num_layers - 1:
            out = jnp.maximum(out, 0.0)   # ReLU; dropout == identity in eval
        h = out.astype(jnp.bfloat16)

    o_ref[...] = out.astype(o_ref.dtype)


def sage_forward(blocks_adj01, feat, params):
    """Fused multi-layer SAGE('mean') forward in a single pallas_call.

    blocks_adj01 : list of [N_dst_l, N_src_l] 0/1 adjacencies (unnormalized)
    feat         : [N_src_0, in_feats] input node features (f32)
    params       : list of {'w_self':[F_in,F_out], 'w_neigh':[F_in,F_out],
                            'bias':[1,F_out]}
    returns      : [N_dst_last, out_feats] f32
    """
    num_layers = len(params)
    assert len(blocks_adj01) == num_layers
    n_dst_list = tuple(int(a.shape[0]) for a in blocks_adj01)
    n_src_list = tuple(int(a.shape[1]) for a in blocks_adj01)
    # DGL block convention: dst nodes are a prefix of src nodes, frontiers chain.
    assert n_src_list[0] == int(feat.shape[0])
    for l in range(num_layers):
        assert n_dst_list[l] <= n_src_list[l]
        if l + 1 < num_layers:
            assert n_src_list[l + 1] == n_dst_list[l]

    out_feats = int(params[-1]["w_self"].shape[1])
    f_out_pad = _round_up(out_feats, LANE)
    n_dst_last = n_dst_list[-1]

    operands = []
    # Exact 0/1 adjacency in bf16 (exactly representable) ...
    for a in blocks_adj01:
        operands.append(a.astype(jnp.bfloat16))
    # ... with the f32 1/deg normalization applied post-matmul in the kernel.
    for a in blocks_adj01:
        deg = jnp.maximum(a.astype(jnp.float32).sum(axis=1, keepdims=True), 1.0)
        operands.append(1.0 / deg)

    # Lane-pad every feature dim to a multiple of 128: all intermediates and
    # matmul operands are full-vreg dense (MXU consumes 128-lane granules
    # anyway, so the extra zeros are free).
    f_in0 = int(feat.shape[1])
    f_in0_pad = _round_up(f_in0, LANE)
    operands.append(
        jnp.pad(feat, ((0, 0), (0, f_in0_pad - f_in0))).astype(jnp.bfloat16))

    for p in params:
        fi, fo = int(p["w_self"].shape[0]), int(p["w_self"].shape[1])
        fi_pad, fo_pad = _round_up(fi, LANE), _round_up(fo, LANE)
        operands.append(
            jnp.pad(p["w_self"], ((0, fi_pad - fi), (0, fo_pad - fo)))
            .astype(jnp.bfloat16))
        operands.append(
            jnp.pad(p["w_neigh"], ((0, fi_pad - fi), (0, fo_pad - fo)))
            .astype(jnp.bfloat16))
        operands.append(
            jnp.pad(p["bias"].astype(jnp.float32), ((0, 0), (0, fo_pad - fo))))

    # VMEM budget from actual footprint (single-buffered: no grid, so no
    # pipelining); headroom for the f32 intermediates; <= 56 MiB for v7x.
    op_bytes = sum(int(x.size) * x.dtype.itemsize for x in operands)
    inter_bytes = sum(n * f_in0_pad for n in n_src_list) * 4 * 4
    vmem_limit = int(min(max(2 * (op_bytes + inter_bytes) + (8 << 20), 32 << 20),
                         56 << 20))

    kernel = functools.partial(_sage_fused_kernel,
                               n_dst_list=n_dst_list,
                               num_layers=num_layers)

    out = pl.pallas_call(
        kernel,
        out_shape=jax.ShapeDtypeStruct((n_dst_last, f_out_pad), jnp.float32),
        compiler_params=pltpu.CompilerParams(vmem_limit_bytes=vmem_limit),
    )(*operands)
    return out[:, :out_feats]


def sage_forward_ref(blocks_adj01, feat, params):
    """Pure-JAX f32 reference (eval semantics, mean aggregator)."""
    hid = feat
    n_layers = len(params)
    for layer_idx, (a, p) in enumerate(zip(blocks_adj01, params)):
        n_dst = a.shape[0]
        deg = jnp.maximum(a.sum(axis=1, keepdims=True), 1.0)
        mean_neigh = (a @ hid) / deg
        hid = hid[:n_dst] @ p["w_self"] + mean_neigh @ p["w_neigh"] + p["bias"]
        if layer_idx != n_layers - 1:
            hid = jnp.maximum(hid, 0.0)
    return hid


def init_sage_params(key, in_feats, hid_feats, num_layers, out_feats):
    """Deterministic parameter init matching the module's layer sizing."""
    params = []
    dims = []
    for layer_idx in range(num_layers):
        if layer_idx == 0:
            dims.append((in_feats, hid_feats))
        elif layer_idx < num_layers - 1:
            dims.append((hid_feats, hid_feats))
        else:
            dims.append((hid_feats, out_feats))
    for (fi, fo) in dims:
        key, k1, k2, k3 = jax.random.split(key, 4)
        scale = 1.0 / jnp.sqrt(jnp.float32(fi))
        params.append({
            "w_self": jax.random.uniform(k1, (fi, fo), jnp.float32,
                                         -scale, scale),
            "w_neigh": jax.random.uniform(k2, (fi, fo), jnp.float32,
                                          -scale, scale),
            "bias": jax.random.uniform(k3, (1, fo), jnp.float32,
                                       -scale, scale),
        })
    return params


def make_adj01(key, n_dst, n_src, p=0.25):
    """Dense 0/1 adjacency (normalization is applied separately as f32 1/deg)."""
    return (jax.random.uniform(key, (n_dst, n_src)) < p).astype(jnp.float32)


if __name__ == "__main__":
    key = jax.random.PRNGKey(0)

    in_feats, hid_feats, out_feats = 16, 32, 8
    num_layers = 2
    n0_src, n0_dst, n1_dst = 64, 48, 32   # shrinking node frontier per block

    k_feat, k_a0, k_a1, k_param = jax.random.split(key, 4)
    feat = jax.random.normal(k_feat, (n0_src, in_feats), jnp.float32)
    blocks_adj01 = [
        make_adj01(k_a0, n0_dst, n0_src),   # layer 0: 64 src -> 48 dst
        make_adj01(k_a1, n1_dst, n0_dst),   # layer 1: 48 src -> 32 dst
    ]
    params = init_sage_params(k_param, in_feats, hid_feats, num_layers,
                              out_feats)

    out = sage_forward(blocks_adj01, feat, params)
    jax.block_until_ready(out)
    assert out.shape == (n1_dst, out_feats), out.shape

    # bf16 MXU operands with f32 accumulation and f32 1/deg normalization:
    # tolerance tightened vs. the previous 0.2.
    ref = sage_forward_ref(blocks_adj01, feat, params)
    err = float(jnp.max(jnp.abs(out - ref)))
    assert err < 0.05, f"max abs err {err}"
    print("KERNEL_OK")
</pallas_src>

<mosaic_0001>
module attributes {stable_mosaic.version = 11 : i64} {
  func.func @_sage_fused_kernel(%arg0: memref<48x64xbf16, #tpu.memory_space<vmem>>, %arg1: memref<32x48xbf16, #tpu.memory_space<vmem>>, %arg2: memref<48x1xf32, #tpu.memory_space<vmem>>, %arg3: memref<32x1xf32, #tpu.memory_space<vmem>>, %arg4: memref<64x128xbf16, #tpu.memory_space<vmem>>, %arg5: memref<128x128xbf16, #tpu.memory_space<vmem>>, %arg6: memref<128x128xbf16, #tpu.memory_space<vmem>>, %arg7: memref<1x128xf32, #tpu.memory_space<vmem>>, %arg8: memref<128x128xbf16, #tpu.memory_space<vmem>>, %arg9: memref<128x128xbf16, #tpu.memory_space<vmem>>, %arg10: memref<1x128xf32, #tpu.memory_space<vmem>>, %arg11: memref<32x128xf32, #tpu.memory_space<vmem>>) attributes {dimension_semantics = [], scalar_prefetch = 0 : i64, scratch_operands = 0 : i64, tpu.core_type = #tpu.core_type<tc>} {
    %c0 = arith.constant 0 : index
    %c0_0 = arith.constant 0 : index
    %0 = vector.load %arg4[%c0, %c0_0] : memref<64x128xbf16, #tpu.memory_space<vmem>>, vector<64x128xbf16>
    %c0_1 = arith.constant 0 : index
    %c0_2 = arith.constant 0 : index
    %1 = vector.load %arg0[%c0_1, %c0_2] : memref<48x64xbf16, #tpu.memory_space<vmem>>, vector<48x64xbf16>
    %cst = arith.constant dense<0.000000e+00> : vector<48x128xf32>
    %2 = tpu.matmul %1, %0, %cst {dimension_numbers = #tpu.dot_dimension_numbers<[1], [0], [0], [1], [0, 0, 1, 1], [], []>} : vector<48x64xbf16>, vector<64x128xbf16>, vector<48x128xf32> -> vector<48x128xf32>
    %c0_3 = arith.constant 0 : index
    %c0_4 = arith.constant 0 : index
    %3 = vector.load %arg2[%c0_3, %c0_4] : memref<48x1xf32, #tpu.memory_space<vmem>>, vector<48x1xf32>
    %4 = vector.broadcast %3 : vector<48x1xf32> to vector<48x128xf32>
    %5 = arith.mulf %2, %4 : vector<48x128xf32>
    %6 = vector.extract_strided_slice %0 {offsets = [0, 0], sizes = [48, 128], strides = [1, 1]} : vector<64x128xbf16> to vector<48x128xbf16>
    %c0_5 = arith.constant 0 : index
    %c0_6 = arith.constant 0 : index
    %7 = vector.load %arg5[%c0_5, %c0_6] : memref<128x128xbf16, #tpu.memory_space<vmem>>, vector<128x128xbf16>
    %cst_7 = arith.constant dense<0.000000e+00> : vector<48x128xf32>
    %8 = tpu.matmul %6, %7, %cst_7 {dimension_numbers = #tpu.dot_dimension_numbers<[1], [0], [0], [1], [0, 0, 1, 1], [], []>} : vector<48x128xbf16>, vector<128x128xbf16>, vector<48x128xf32> -> vector<48x128xf32>
    %9 = arith.truncf %5 : vector<48x128xf32> to vector<48x128xbf16>
    %c0_8 = arith.constant 0 : index
    %c0_9 = arith.constant 0 : index
    %10 = vector.load %arg6[%c0_8, %c0_9] : memref<128x128xbf16, #tpu.memory_space<vmem>>, vector<128x128xbf16>
    %cst_10 = arith.constant dense<0.000000e+00> : vector<48x128xf32>
    %11 = tpu.matmul %9, %10, %cst_10 {dimension_numbers = #tpu.dot_dimension_numbers<[1], [0], [0], [1], [0, 0, 1, 1], [], []>} : vector<48x128xbf16>, vector<128x128xbf16>, vector<48x128xf32> -> vector<48x128xf32>
    %12 = arith.addf %8, %11 : vector<48x128xf32>
    %c0_11 = arith.constant 0 : index
    %c0_12 = arith.constant 0 : index
    %13 = vector.load %arg7[%c0_11, %c0_12] : memref<1x128xf32, #tpu.memory_space<vmem>>, vector<1x128xf32>
    %14 = vector.broadcast %13 : vector<1x128xf32> to vector<48x128xf32>
    %15 = arith.addf %12, %14 : vector<48x128xf32>
    %cst_13 = arith.constant 0.000000e+00 : f32
    %16 = vector.broadcast %cst_13 : f32 to vector<48x128xf32>
    %17 = arith.maximumf %15, %16 : vector<48x128xf32>
    %18 = arith.truncf %17 : vector<48x128xf32> to vector<48x128xbf16>
    %c0_14 = arith.constant 0 : index
    %c0_15 = arith.constant 0 : index
    %19 = vector.load %arg1[%c0_14, %c0_15] : memref<32x48xbf16, #tpu.memory_space<vmem>>, vector<32x48xbf16>
    %cst_16 = arith.constant dense<0.000000e+00> : vector<32x128xf32>
    %20 = tpu.matmul %19, %18, %cst_16 {dimension_numbers = #tpu.dot_dimension_numbers<[1], [0], [0], [1], [0, 0, 1, 1], [], []>} : vector<32x48xbf16>, vector<48x128xbf16>, vector<32x128xf32> -> vector<32x128xf32>
    %c0_17 = arith.constant 0 : index
    %c0_18 = arith.constant 0 : index
    %21 = vector.load %arg3[%c0_17, %c0_18] : memref<32x1xf32, #tpu.memory_space<vmem>>, vector<32x1xf32>
    %22 = vector.broadcast %21 : vector<32x1xf32> to vector<32x128xf32>
    %23 = arith.mulf %20, %22 : vector<32x128xf32>
    %24 = vector.extract_strided_slice %18 {offsets = [0, 0], sizes = [32, 128], strides = [1, 1]} : vector<48x128xbf16> to vector<32x128xbf16>
    %c0_19 = arith.constant 0 : index
    %c0_20 = arith.constant 0 : index
    %25 = vector.load %arg8[%c0_19, %c0_20] : memref<128x128xbf16, #tpu.memory_space<vmem>>, vector<128x128xbf16>
    %cst_21 = arith.constant dense<0.000000e+00> : vector<32x128xf32>
    %26 = tpu.matmul %24, %25, %cst_21 {dimension_numbers = #tpu.dot_dimension_numbers<[1], [0], [0], [1], [0, 0, 1, 1], [], []>} : vector<32x128xbf16>, vector<128x128xbf16>, vector<32x128xf32> -> vector<32x128xf32>
    %27 = arith.truncf %23 : vector<32x128xf32> to vector<32x128xbf16>
    %c0_22 = arith.constant 0 : index
    %c0_23 = arith.constant 0 : index
    %28 = vector.load %arg9[%c0_22, %c0_23] : memref<128x128xbf16, #tpu.memory_space<vmem>>, vector<128x128xbf16>
    %cst_24 = arith.constant dense<0.000000e+00> : vector<32x128xf32>
    %29 = tpu.matmul %27, %28, %cst_24 {dimension_numbers = #tpu.dot_dimension_numbers<[1], [0], [0], [1], [0, 0, 1, 1], [], []>} : vector<32x128xbf16>, vector<128x128xbf16>, vector<32x128xf32> -> vector<32x128xf32>
    %30 = arith.addf %26, %29 : vector<32x128xf32>
    %c0_25 = arith.constant 0 : index
    %c0_26 = arith.constant 0 : index
    %31 = vector.load %arg10[%c0_25, %c0_26] : memref<1x128xf32, #tpu.memory_space<vmem>>, vector<1x128xf32>
    %32 = vector.broadcast %31 : vector<1x128xf32> to vector<32x128xf32>
    %33 = arith.addf %30, %32 : vector<32x128xf32>
    %c0_27 = arith.constant 0 : index
    %c0_28 = arith.constant 0 : index
    %34 = vector.load %arg11[%c0_27, %c0_28] : memref<32x128xf32, #tpu.memory_space<vmem>>, vector<32x128xf32>
    tpu.vector_store %arg11[%c0_27, %c0_28], %33 {strides = array<i32>} : memref<32x128xf32, #tpu.memory_space<vmem>>, vector<32x128xf32>,
    return
  }
}

</mosaic_0001>

<bundles_post_ra>
// kernel: tpu_custom_call.1
= control target key start
LH: loop header
LB: loop body
LE: loop exit
PB: predicated region body
PF: predicated region fallthrough
CT: control target
= control target key end

     0   :  { %16 = vsyncpa [#allocation3], 0  ;;  %s1315_s0 = inlined_call_operand.hbm [shape: bf16[48,64], index: 0, kind: input, shape index: {}]   ;;  %s1316_s1 = inlined_call_operand.vmem [shape: bf16[32,48], index: 1, kind: input, shape index: {}]   ;;  %s1317_s2 = inlined_call_operand.vmem [shape: f32[48,1], index: 2, kind: input, shape index: {}]   ;;  %s1318_s3 = inlined_call_operand.vmem [shape: f32[32,1], index: 3, kind: input, shape index: {}]   ;;  %s1319_s4 = inlined_call_operand.hbm [shape: bf16[64,128], index: 4, kind: input, shape index: {}]   ;;  %s1320_s5 = inlined_call_operand.vmem [shape: bf16[128,128], index: 5, kind: input, shape index: {}]   ;;  %s1321_s6 = inlined_call_operand.hbm [shape: bf16[128,128], index: 6, kind: input, shape index: {}]   ;;  %s1322_s7 = inlined_call_operand.vmem [shape: f32[1,128], index: 7, kind: input, shape index: {}]   ;;  %s1323_s8 = inlined_call_operand.hbm [shape: bf16[128,128], index: 8, kind: input, shape index: {}]   ;;  %s1324_s9 = inlined_call_operand.hbm [shape: bf16[128,128], index: 9, kind: input, shape index: {}]   ;;  %s1325_s10 = inlined_call_operand.vmem [shape: f32[1,128], index: 10, kind: input, shape index: {}]   ;;  %s1326_s11 = inlined_call_operand.hbm [shape: f32[32,128], index: 11, kind: output, shape index: {}]  }
   0x1   :  { %17 = vsyncpa [#allocation6], 0 }
   0x2   :  { %18 = vsyncpa [#allocation9], 0 }
   0x3   :  { %19 = vsyncpa [#allocation4], 0  ;;  %s43_s19 = sshll.u32 %s1319_s4, 4  ;;  %s1121_s20 = smov [#allocation5]   ;;  %s44_s19 = int_to_ptr.hbm [resolvable:$true] %s43_s19 }
   0x4   :  { %s45_s21 = sshll.u32 %s1121_s20, 4  ;;  %s73_s24 = sshll.u32 %s1323_s8, 4  ;;  %s46_s21 = int_to_ptr.vmem [resolvable:$true] %s45_s21  ;;  %s74_s24 = int_to_ptr.hbm [resolvable:$true] %s73_s24 }
   0x5   :  { %s1122_s25 = smov 64   ;;  %s1123_s26 = smov 4  }
   0x6   :  { %51 = dma.hbm_to_vmem [thread:$0]  %s44_s19, 512, %s46_s21, [#allocation6], %s1122_s25, %s1122_s25, %s1123_s26  }
   0x7   :  { %s1124_s27 = smov [#allocation8]   ;;  %s24_s12 = sshll.u32 %s1315_s0, 4  ;;  %s25_s12 = int_to_ptr.hbm [resolvable:$true] %s24_s12 }
   0x8   :  { %s75_s28 = sshll.u32 %s1124_s27, 4  ;;  %s58_s14 = sshll.u32 %s1321_s6, 4  ;;  %s76_s28 = int_to_ptr.vmem [resolvable:$true] %s75_s28  ;;  %s59_s14 = int_to_ptr.hbm [resolvable:$true] %s58_s14 }
   0x9   :  { %81 = dma.hbm_to_vmem [thread:$0]  %s74_s24, 1024, %s76_s28, [#allocation9], %s1122_s25, %s1122_s25, %s1123_s26  }
   0xa   :  { %s1125_s15 = smov [#allocation2]   ;;  %s1126_s8 = smov [#allocation7]  }
   0xb   :  { %s26_s16 = sshll.u32 %s1125_s15, 4  ;;  %s60_s17 = sshll.u32 %s1126_s8, 4  ;;  %s27_s16 = int_to_ptr.vmem [resolvable:$true] %s26_s16  ;;  %s61_s17 = int_to_ptr.vmem [resolvable:$true] %s60_s17 }
   0xc   :  { %32 = dma.hbm_to_vmem [thread:$0]  %s25_s12, 384, %s27_s16, [#allocation3], %s1122_s25, %s1122_s25, %s1123_s26  }
   0xd   :  { %s86_s20 = sshll.u32 %s1324_s9, 4  ;;  %s1127_s0 = smov [#allocation10]   ;;  %s87_s20 = int_to_ptr.hbm [resolvable:$true] %s86_s20 }
   0xe   :  { %66 = dma.hbm_to_vmem [thread:$0]  %s59_s14, 1024, %s61_s17, [#allocation6], %s1122_s25, %s1122_s25, %s1123_s26  }
   0xf   :  { %s88_s21 = sshll.u32 %s1127_s0, 4  ;;  %s89_s21 = int_to_ptr.vmem [resolvable:$true] %s88_s21 }
  0x10   :  { %94 = dma.hbm_to_vmem [thread:$0]  %s87_s20, 1024, %s89_s21, [#allocation9], %s1122_s25, %s1122_s25, %s1123_s26  }
  0x11   :  { %1113 = dma.done.wait [#allocation3], 384  }
  0x12   :  { %1114 = vsyncadd [#allocation3], 4294966912 }
  0x13   :  { %1115 = dma.done.wait [#allocation6], 1536  }
  0x14   :  { %1116 = vsyncadd [#allocation6], 4294965760 }
  0x15   :  { %1117 = dma.done.wait [#allocation9], 2048  }
  0x16   :  { %1118 = vsyncadd [#allocation9], 4294965248  ;;  %v1128_v0 = vmov 0   ;;  %v907_v1 = vld [vmem:[#allocation5 + $0x18] sm:$0xff]  ;;  %v205_v2 = vld [vmem:[%s1317_s2] sm:$0xff]  ;;  %vm171_vm0 = vcmask 523264  }
  0x17   :  { %964 = vset.pattern.permute.xlu0 %v1128_v0  ;;  %965 = vset.pattern.permute.xlu1 %v1128_v0  ;;  %v1210_v3 = vld [vmem:[#allocation5 + $0x10] sm:$0xff]  ;;  %v207_v4 = vld [vmem:[%s1317_s2 + $0x10] sm:$0xff]  ;;  %v905_v5 = vld [vmem:[#allocation5 + $0x8] sm:$0xff]  ;;  %vm480_vm1 = vcmask 392192   ;;  %s1129_s15 = smov [#allocation11]   ;;  %s1130_s18 = smov 128  }
  0x18   :  { %966 = vset.pattern.permute.xlu2 %v1128_v0  ;;  %213 = vperm.xlu0 %964, %v205_v2   ;;  %v206_v6 = vld [vmem:[%s1317_s2 + $0x8] sm:$0xff]  ;;  %v208_v7 = vld [vmem:[%s1317_s2 + $0x18] sm:$0xff]  ;;  %v908_v9 = vld [vmem:[#allocation2] sm:$0xff]  ;;  %s718_s16 = sshll.u32 %s1129_s15, 4  ;;  %s1131_s19 = smov 8   ;;  %s719_s16 = int_to_ptr.vmem [resolvable:$true] %s718_s16 }
  0x19   :  { %185 = vmatpush.bf16.msra.mxu0 %v907_v1  ;;  %223 = vperm.xlu1 %965, %v207_v4   ;;  %v904_v8 = vld [vmem:[#allocation5] sm:$0xff]  ;;  %v506_v10 = vld [vmem:[%s1318_s3] sm:$0xff]  ;;  %v507_v11 = vld [vmem:[%s1318_s3 + $0x8] sm:$0xff] }
  0x1a   :  { %v209_v12 = vld [vmem:[%s1317_s2 + $0x20] sm:$0xff]  ;;  %v918_v13 = vld [vmem:[%s1320_s5 + $0x38] sm:$0xff]  ;;  %v917_v14 = vld [vmem:[%s1320_s5 + $0x30] sm:$0xff] }
  0x1b   :  { %233 = vperm.xlu2 %966, %v209_v12   ;;  %402 = vmatpush.bf16.msra.mxu2 %v918_v13  ;;  %v509_v15 = vld [vmem:[%s1318_s3 + $0x18] sm:$0xff]  ;;  %v210_v16 = vld [vmem:[%s1317_s2 + $0x28] sm:$0xff]  ;;  %v508_v19 = vld [vmem:[%s1318_s3 + $0x10] sm:$0xff] }
  0x1c   :  { %v916_v17 = vld [vmem:[%s1320_s5 + $0x28] sm:$0xff]  ;;  %v910_v20 = vld [vmem:[#allocation2 + $0x10] sm:$0xff]  ;;  %v915_v21 = vld [vmem:[%s1320_s5 + $0x20] sm:$0xff] }
  0x1d   :  { %186 = vmatpush.bf16.msra.mxu0 %v1210_v3  ;;  %v909_v18 = vld [vmem:[#allocation2 + $0x8] sm:$0xff]  ;;  %v926_v22 = vld [vmem:[#allocation7 + $0x38] sm:$0xff]  ;;  %v914_v23 = vld [vmem:[%s1320_s5 + $0x18] sm:$0xff] }
  0x1e   :  { %330 = vmatpush.bf16.msra.mxu1 %v926_v22  ;;  %v925_v24 = vld [vmem:[#allocation7 + $0x30] sm:$0xff]  ;;  %v913_v25 = vld [vmem:[%s1320_s5 + $0x10] sm:$0xff]  ;;  %v924_v26 = vld [vmem:[#allocation7 + $0x28] sm:$0xff] }
  0x1f   :  { %403 = vmatpush.bf16.msra.mxu2 %v917_v14  ;;  %v912_v27 = vld [vmem:[%s1320_s5 + $0x8] sm:$0xff]  ;;  %v923_v28 = vld [vmem:[#allocation7 + $0x20] sm:$0xff]  ;;  %v911_v29 = vld [vmem:[%s1320_s5] sm:$0xff] }
  0x20   :  { %218 = vperm.xlu0 %964, %v206_v6   ;;  %v922_v30 = vld [vmem:[#allocation7 + $0x18] sm:$0xff]  ;;  %v921_v31 = vld [vmem:[#allocation7 + $0x10] sm:$0xff]  ;;  %v920_v32 = vld [vmem:[#allocation7 + $0x8] sm:$0xff] }
  0x21   :  { %187 = vmatpush.bf16.msra.mxu0 %v905_v5  ;;  %228 = vperm.xlu1 %965, %v208_v7   ;;  %v919_v33 = vld [vmem:[#allocation7] sm:$0xff]  ;;  %v1268_v41 = vld [vmem:[#allocation8 + $0x38] sm:$0xff]  ;;  %v1271_v56 = vld [vmem:[#allocation8 + $0x30] sm:$0xff] }
  0x22   :  { %331 = vmatpush.bf16.msra.mxu1 %v925_v24  ;;  %v1274_v57 = vld [vmem:[#allocation8 + $0x28] sm:$0xff]  ;;  %v1277_v58 = vld [vmem:[#allocation8 + $0x20] sm:$0xff]  ;;  %v1280_v59 = vld [vmem:[#allocation8 + $0x18] sm:$0xff] }
  0x23   :  { %238 = vperm.xlu2 %966, %v210_v16   ;;  %404 = vmatpush.bf16.msra.mxu2 %v916_v17  ;;  %v1283_v60 = vld [vmem:[#allocation8 + $0x10] sm:$0xff]  ;;  %v1286_v61 = vld [vmem:[#allocation8 + $0x8] sm:$0xff]  ;;  %v1289_v62 = vld [vmem:[#allocation8] sm:$0xff] }
  0x25   :  { %188 = vmatpush.bf16.msra.mxu0 %v904_v8 }
  0x26   :  { %332 = vmatpush.bf16.msra.mxu1 %v924_v26 }
  0x27   :  { %405 = vmatpush.bf16.msra.mxu2 %v915_v21 }
  0x28   :  { %763 = vmatmul.msk.bf16.vlgmr.msra.gmra.mxu0 %vm171_vm0, %v908_v9  ;;  %512 = vperm.xlu0 %964, %v506_v10  }
  0x29   :  { %517 = vperm.xlu1 %965, %v507_v11   ;;  %683 = vmatpush.bf16.msrb.mxu0 %v1268_v41 }
  0x2a   :  { %333 = vmatpush.bf16.msra.mxu1 %v923_v28 }
  0x2b   :  { %522 = vperm.xlu2 %966, %v508_v19   ;;  %406 = vmatpush.bf16.msra.mxu2 %v914_v23 }
  0x2d   :  { %684 = vmatpush.bf16.msrb.mxu0 %v1271_v56 }
  0x2e   :  { %334 = vmatpush.bf16.msra.mxu1 %v922_v30 }
  0x2f   :  { %407 = vmatpush.bf16.msra.mxu2 %v913_v25 }
  0x30   :  { %527 = vperm.xlu0 %964, %v509_v15  }
  0x31   :  { %685 = vmatpush.bf16.msrb.mxu0 %v1274_v57 }
  0x32   :  { %335 = vmatpush.bf16.msra.mxu1 %v921_v31 }
  0x33   :  { %408 = vmatpush.bf16.msra.mxu2 %v912_v27 }
  0x35   :  { %686 = vmatpush.bf16.msrb.mxu0 %v1277_v58 }
  0x36   :  { %336 = vmatpush.bf16.msra.mxu1 %v920_v32 }
  0x37   :  { %409 = vmatpush.bf16.msra.mxu2 %v911_v29 }
  0x38   :  { %764 = vmatmul.msk.bf16.gmra.mxu0 %vm171_vm0, %v909_v18 }
  0x39   :  { %687 = vmatpush.bf16.msrb.mxu0 %v1280_v59 }
  0x3a   :  { %410 = vmatmul.bf16.vlgmr.msra.gmra.mxu2 %v904_v8  ;;  %337 = vmatpush.bf16.msra.mxu1 %v919_v33 }
  0x3d   :  { %688 = vmatpush.bf16.msrb.mxu0 %v1283_v60 }
  0x41   :  { %689 = vmatpush.bf16.msrb.mxu0 %v1286_v61 }
  0x45   :  { %690 = vmatpush.bf16.msrb.mxu0 %v1289_v62 }
  0x48   :  { %765 = vmatmul.msk.bf16.gmra.mxu0 %vm171_vm0, %v910_v20 }
  0x4a   :  { %415 = vmatmul.bf16.gmra.mxu2 %v905_v5 }
  0x5a   :  { %420 = vmatmul.bf16.gmra.mxu2 %v1210_v3  ;;  %v967_v3 = vld [vmem:[%s1322_s7] ss:$0 sm:$0xff] }
  0x75   :  { %v234_v49 = vpop.permute.xlu2 %233 }
  0x7d   :  { %v239_v51 = vpop.permute.xlu2 %238 }
  0x8a   :  { %v214_v34 = vpop.permute.xlu0 %213 }
  0x8b   :  { %v224_v42 = vpop.permute.xlu1 %223 }
  0x92   :  { %v219_v36 = vpop.permute.xlu0 %218 }
  0x93   :  { %v229_v44 = vpop.permute.xlu1 %228 }
  0xa5   :  { %v190_v35 = vpop.f32.mrf.mxu0 }
  0xa6   :  { %v241_v38 = vmul.f32 %v214_v34, %v190_v35 }
  0xad   :  { %v192_v37 = vpop.f32.mrf.mxu0 }
  0xae   :  { %v242_v39 = vmul.f32 %v219_v36, %v192_v37 }
  0xb0   :  { %v263_v40 = vpack.c.bf16 %v242_v39, %v241_v38 }
  0xb2   :  { %338 = vmatmul.bf16.vlgmr.msra.gmra.mxu1 %v263_v40 }
  0xb5   :  { %v195_v43 = vpop.f32.mrf.mxu0 }
  0xb6   :  { %v243_v46 = vmul.f32 %v224_v42, %v195_v43 }
  0xbd   :  { %v197_v45 = vpop.f32.mrf.mxu0  ;;  %v411_v63 = vpop.f32.mrf.mxu2 }
  0xbe   :  { %v244_v47 = vmul.f32 %v229_v44, %v197_v45 }
  0xc0   :  { %v264_v48 = vpack.c.bf16 %v244_v47, %v243_v46  ;;  %v927_v46 = vld [vmem:[%s1316_s1] sm:$0xff]  ;;  %v928_v47 = vld [vmem:[%s1316_s1 + $0x8] sm:$0xff] }
  0xc2   :  { %343 = vmatmul.bf16.gmra.mxu1 %v264_v48  ;;  %v944_v48 = vld [vmem:[#allocation10 + $0x38] sm:$0xff] }
  0xc5   :  { %v200_v50 = vpop.f32.mrf.mxu0  ;;  %v413_v1 = vpop.f32.mrf.mxu2 }
  0xc6   :  { %v245_v53 = vmul.f32 %v234_v49, %v200_v50  ;;  %v943_v49 = vld [vmem:[#allocation10 + $0x30] sm:$0xff]  ;;  %v942_v50 = vld [vmem:[#allocation10 + $0x28] sm:$0xff] }
  0xcd   :  { %v202_v52 = vpop.f32.mrf.mxu0  ;;  %v416_v8 = vpop.f32.mrf.mxu2 }
  0xce   :  { %v246_v54 = vmul.f32 %v239_v51, %v202_v52  ;;  %v941_v51 = vld [vmem:[#allocation10 + $0x20] sm:$0xff]  ;;  %v940_v52 = vld [vmem:[#allocation10 + $0x18] sm:$0xff] }
  0xd0   :  { %v265_v55 = vpack.c.bf16 %v246_v54, %v245_v53  ;;  %v939_v53 = vld [vmem:[#allocation10 + $0x10] sm:$0xff]  ;;  %v938_v54 = vld [vmem:[#allocation10 + $0x8] sm:$0xff] }
  0xd2   :  { %348 = vmatmul.bf16.gmra.mxu1 %v265_v55  ;;  %v937_v55 = vld [vmem:[#allocation10] sm:$0xff] }
  0xd5   :  { %v418_v17 = vpop.f32.mrf.mxu2 }
  0xdd   :  { %v421_v19 = vpop.f32.mrf.mxu2 }
  0xe5   :  { %v423_v26 = vpop.f32.mrf.mxu2 }
 0x12f   :  { %v339_v0 = vpop.f32.mrf.mxu1 }
 0x130   :  { %v412_v2 = vadd.f32 %v411_v63, %v339_v0  ;;  %v513_v0 = vpop.permute.xlu0 %512 }
 0x132   :  { %v430_v4 = vadd.f32 %v967_v3, %v412_v2 }
 0x134   :  { %v436_v6 = vmax.f32 %v430_v4, 0.0 }
 0x136   :  { %v442_v10 = vpack.c.bf16 %v436_v6, %v436_v6 }
 0x137   :  { %v341_v5 = vpop.f32.mrf.mxu1 }
 0x138   :  { %v414_v7 = vadd.f32 %v413_v1, %v341_v5  ;;  %v468_v14 = vunpack.c.l.b16 %v442_v10  ;;  %v518_v1 = vpop.permute.xlu1 %517  ;;  %v523_v5 = vpop.permute.xlu2 %522 }
 0x13a   :  { %v431_v9 = vadd.f32 %v967_v3, %v414_v7 }
 0x13c   :  { %v437_v11 = vmax.f32 %v431_v9, 0.0 }
 0x13e   :  { %v443_v12 = vpack.c.bf16 %v437_v11, %v437_v11 }
 0x13f   :  { %v344_v13 = vpop.f32.mrf.mxu1 }
 0x140   :  { %v469_v15 = vunpack.c.l.b16 %v443_v12  ;;  %v417_v23 = vadd.f32 %v416_v8, %v344_v13 }
 0x142   :  { %v474_v16 = vpack.c.b16 %v469_v15, %v468_v14  ;;  %v432_v28 = vadd.f32 %v967_v3, %v417_v23 }
 0x144   :  { %691 = vmatmul.bf16.vlgmr.msrb.gmra.mxu0 %v474_v16  ;;  %v438_v33 = vmax.f32 %v432_v28, 0.0 }
 0x146   :  { %v444_v38 = vpack.c.bf16 %v438_v33, %v438_v33 }
 0x147   :  { %v346_v18 = vpop.f32.mrf.mxu1 }
 0x148   :  { %v419_v22 = vadd.f32 %v418_v17, %v346_v18  ;;  %v470_v44 = vunpack.c.l.b16 %v444_v38 }
 0x14a   :  { %v433_v25 = vadd.f32 %v967_v3, %v419_v22 }
 0x14c   :  { %v439_v31 = vmax.f32 %v433_v25, 0.0 }
 0x14e   :  { %v445_v36 = vpack.c.bf16 %v439_v31, %v439_v31 }
 0x14f   :  { %v349_v20 = vpop.f32.mrf.mxu1 }
 0x150   :  { %v422_v21 = vadd.f32 %v421_v19, %v349_v20  ;;  %v471_v43 = vunpack.c.l.b16 %v445_v36 }
 0x152   :  { %v434_v24 = vadd.f32 %v967_v3, %v422_v21  ;;  %v475_v45 = vpack.c.b16 %v471_v43, %v470_v44 }
 0x154   :  { %v440_v30 = vmax.f32 %v434_v24, 0.0 }
 0x156   :  { %v446_v35 = vpack.c.bf16 %v440_v30, %v440_v30 }
 0x157   :  { %v351_v27 = vpop.f32.mrf.mxu1 }
 0x158   :  { %v424_v29 = vadd.f32 %v423_v26, %v351_v27  ;;  %v472_v39 = vunpack.c.l.b16 %v446_v35 }
 0x15a   :  { %v435_v32 = vadd.f32 %v967_v3, %v424_v29 }
 0x15c   :  { %v441_v34 = vmax.f32 %v435_v32, 0.0 }
 0x15e   :  { %v447_v37 = vpack.c.bf16 %v441_v34, %v441_v34 }
 0x160   :  { %v473_v40 = vunpack.c.l.b16 %v447_v37 }
 0x162   :  { %v476_v42 = vpack.c.b16 %v473_v40, %v472_v39 }
 0x164   :  { %492 = vmatpush.bf16.msra.mxu3 %v476_v42 }
 0x168   :  { %493 = vmatpush.bf16.msra.mxu3 %v475_v45 }
 0x16c   :  { %494 = vmatpush.bf16.msra.mxu3 %v474_v16 }
 0x16f   :  { %838 = vmatmul.msk.bf16.vlgmr.msra.gmra.mxu3 %vm480_vm1, %v927_v46 }
 0x170   :  { %616 = vmatpush.bf16.msrb.mxu3 %v944_v48 }
 0x174   :  { %617 = vmatpush.bf16.msrb.mxu3 %v943_v49 }
 0x178   :  { %618 = vmatpush.bf16.msrb.mxu3 %v942_v50 }
 0x17c   :  { %619 = vmatpush.bf16.msrb.mxu3 %v941_v51 }
 0x17f   :  { %839 = vmatmul.msk.bf16.gmra.mxu3 %vm480_vm1, %v928_v47 }
 0x180   :  { %620 = vmatpush.bf16.msrb.mxu3 %v940_v52 }
 0x184   :  { %621 = vmatpush.bf16.msrb.mxu3 %v939_v53 }
 0x188   :  { %622 = vmatpush.bf16.msrb.mxu3 %v938_v54 }
 0x18c   :  { %623 = vmatpush.bf16.msrb.mxu3 %v937_v55 }
 0x190   :  { %945 = vmatpush.bf16.msra.mxu3 %v1268_v41 }
 0x194   :  { %946 = vmatpush.bf16.msra.mxu3 %v1271_v56 }
 0x198   :  { %947 = vmatpush.bf16.msra.mxu3 %v1274_v57  ;;  %v528_v57 = vpop.permute.xlu0 %527 }
 0x19c   :  { %948 = vmatpush.bf16.msra.mxu3 %v1277_v58 }
 0x1a0   :  { %949 = vmatpush.bf16.msra.mxu3 %v1280_v59 }
 0x1a4   :  { %950 = vmatpush.bf16.msra.mxu3 %v1283_v60 }
 0x1a8   :  { %951 = vmatpush.bf16.msra.mxu3 %v1286_v61  ;;  %v968_v61 = vld [vmem:[%s1325_s10] ss:$0 sm:$0xff]  ;;  %s720_s10 = sshll.u32 %s1326_s11, 4  ;;  %s721_s10 = int_to_ptr.hbm [resolvable:$true] %s720_s10 }
 0x1ac   :  { %952 = vmatpush.bf16.msra.mxu3 %v1289_v62 }
 0x1c1   :  { %v692_v60 = vpop.f32.mrf.mxu0 }
 0x1c9   :  { %v694_v10 = vpop.f32.mrf.mxu0 }
 0x1f2   :  { %v496_v63 = vpop.f32.mrf.mxu3 }
 0x1f3   :  { %v530_v3 = vmul.f32 %v513_v0, %v496_v63 }
 0x1fa   :  { %v498_v2 = vpop.f32.mrf.mxu3 }
 0x1fb   :  { %v531_v41 = vmul.f32 %v518_v1, %v498_v2 }
 0x1fd   :  { %v550_v4 = vpack.c.bf16 %v531_v41, %v530_v3 }
 0x1ff   :  { %624 = vmatmul.bf16.vlgmr.msrb.gmra.mxu3 %v550_v4 }
 0x202   :  { %v501_v56 = vpop.f32.mrf.mxu3 }
 0x203   :  { %v532_v6 = vmul.f32 %v523_v5, %v501_v56 }
 0x20a   :  { %v503_v58 = vpop.f32.mrf.mxu3 }
 0x20b   :  { %v533_v59 = vmul.f32 %v528_v57, %v503_v58 }
 0x20d   :  { %v551_v7 = vpack.c.bf16 %v533_v59, %v532_v6 }
 0x20f   :  { %629 = vmatmul.bf16.gmra.mxu3 %v551_v7 }
 0x21f   :  { %696 = vmatmul.bf16.vlgmr.msra.gmra.mxu3 %v475_v45 }
 0x282   :  { %v625_v62 = vpop.f32.mrf.mxu3 }
 0x283   :  { %v693_v8 = vadd.f32 %v692_v60, %v625_v62 }
 0x285   :  { %v706_v9 = vadd.f32 %v968_v61, %v693_v8 }
 0x287   :  { %710 = vst [vmem:[#allocation11] sm:$0xff] %v706_v9 }
 0x28a   :  { %v627_v11 = vpop.f32.mrf.mxu3 }
 0x28b   :  { %v695_v12 = vadd.f32 %v694_v10, %v627_v11 }
 0x28d   :  { %v707_v13 = vadd.f32 %v968_v61, %v695_v12 }
 0x28f   :  { %711 = vst [vmem:[#allocation11 + $0x8] sm:$0xff] %v707_v13 }
 0x292   :  { %v630_v14 = vpop.f32.mrf.mxu3 }
 0x29a   :  { %v632_v15 = vpop.f32.mrf.mxu3 }
 0x2a2   :  { %v697_v16 = vpop.f32.mrf.mxu3 }
 0x2a3   :  { %v698_v17 = vadd.f32 %v697_v16, %v630_v14 }
 0x2a5   :  { %v708_v18 = vadd.f32 %v968_v61, %v698_v17 }
 0x2a7   :  { %712 = vst [vmem:[#allocation11 + $0x10] sm:$0xff] %v708_v18 }
 0x2aa   :  { %v699_v19 = vpop.f32.mrf.mxu3 }
 0x2ab   :  { %v700_v20 = vadd.f32 %v699_v19, %v632_v15 }
 0x2ad   :  { %v709_v21 = vadd.f32 %v968_v61, %v700_v20 }
 0x2af   :  { %713 = vst [vmem:[#allocation11 + $0x18] sm:$0xff] %v709_v21 }
 0x2b0   :  { %726 = dma.vmem_to_hbm [thread:$0]  %s719_s16, 512, %s721_s10, [#allocation4], %s1130_s18, %s1130_s18, %s1131_s19  }
 0x2b1   :  { %1119 = dma.done.wait [#allocation4], 512  }
 0x2b2   :  { %1120 = vsyncadd [#allocation4], 4294966784 }
 0x2b3   :  { %731 = vsyncpa [#allocation3], 1 }
 0x2b4   :  { %732 = vsyncpa [#allocation6], 1 }
 0x2b5   :  { %733 = vsyncpa [#allocation9], 1 }
 0x2b6   :  { %734 = vsyncpa [#allocation4], 1 }

</bundles_post_ra>
